<compile_context>
chip_gen: v7x
topology: tpu7x:2x2x1
jax: 0.10.0
libtpu: 0.0.40
codegen_flags: <defaults>
</compile_context>

<pallas_src>
import functools
import math

import jax
import jax.numpy as jnp
from jax import lax
from jax.experimental import pallas as pl
from jax.experimental.pallas import tpu as pltpu


def _round_up(x, m):
    return (x + m - 1) // m * m


def _tpu_budget():
    """Return (query-tile target, vmem_limit_bytes) for the local TPU generation.

    v5e / v6e: 128 MiB VMEM -> TQ=256 and ~100 MiB amortize per-step overhead.
    v7x:        64 MiB VMEM -> keep TQ=128 and a <=56 MiB budget.
    Unknown / older generations: conservative 128 / 48 MiB."""
    try:
        kind = jax.devices()[0].device_kind.lower()
    except Exception:
        kind = ""
    if "v7" in kind:
        return 128, 56 * 1024 * 1024
    if "v6" in kind or "v5e" in kind or "v5 lite" in kind or "v5lite" in kind:
        return 256, 100 * 1024 * 1024
    return 128, 48 * 1024 * 1024


# --------------------------------------------------------------------------
# Projection kernel: head-major, lane-padded bf16 Q/K/V.
# --------------------------------------------------------------------------
def _project_kernel(seq1_ref, seq2_ref, wq_ref, wk_ref, wv_ref,
                    q_ref, k_ref, v_ref, *, head, split_pad, heads_per_chunk):
    s1 = seq1_ref[0]                                   # [tproj, D] bf16
    s2 = seq2_ref[0]
    # Chunk the output (N) dimension in <= ~256-column pieces so the live f32
    # accumulator stays small; each chunk is cast to bf16 head-major storage
    # before the next chunk is computed (v7x VMEM budget).
    for h0 in range(0, head, heads_per_chunk):
        h1 = min(head, h0 + heads_per_chunk)
        cols = slice(h0 * split_pad, h1 * split_pad)
        for src, w_ref, out_ref in ((s1, wq_ref, q_ref),
                                    (s2, wk_ref, k_ref),
                                    (s2, wv_ref, v_ref)):
            acc = jnp.dot(src, w_ref[:, cols],
                          preferred_element_type=jnp.float32)
            for hh in range(h0, h1):                   # lane-aligned static slices
                lo = (hh - h0) * split_pad
                out_ref[0, hh] = acc[:, lo:lo + split_pad].astype(jnp.bfloat16)


# --------------------------------------------------------------------------
# Attention kernel: one (batch, head, q-tile) step.
# --------------------------------------------------------------------------
def _attention_kernel(q_ref, k_ref, v_ref, mask_ref,
                      scores_ref, ctx_ref, sums_ref, *,
                      s_real, inv_sqrt_bert, trac_att_k, use_complement_mask):
    qi = pl.program_id(2)
    S = k_ref.shape[2]                                 # padded key length
    tq = q_ref.shape[2]
    padded = S != s_real

    q = q_ref[0, 0]                                    # [tq, split_pad] bf16
    k = k_ref[0, 0]                                    # [S,  split_pad] bf16 (resident)
    v = v_ref[0, 0]                                    # [S,  split_pad] bf16 (resident)

    # scores = softmax(tanh(Q K^T) / sqrt(bert_dim)); tanh bounds the logits so
    # no max-subtraction is needed; denominators use the EUP reciprocal.
    s = lax.dot_general(q, k, (((1,), (1,)), ((), ())),
                        preferred_element_type=jnp.float32)    # [tq, S]
    s = jnp.tanh(s) * inv_sqrt_bert
    e = jnp.exp(s)

    # Column iota materialized once per tile (JAX does not CSE broadcast_in_dim).
    col = lax.broadcasted_iota(jnp.int32, (tq, S), 1)
    if padded:
        kvalid = col < s_real
        e = jnp.where(kvalid, e, 0.0)                  # mask padded key columns
    scores = e * pl.reciprocal(jnp.sum(e, axis=-1, keepdims=True), approx=True)

    # ---- iterative top-k (first-index argmax), mirroring the torch loop ----
    def select_step(carry):
        scores_max, mask_k_all = carry
        mval = jnp.max(scores_max, axis=-1, keepdims=True)
        first = jnp.min(jnp.where(scores_max == mval, col, S),
                        axis=-1, keepdims=True)
        is_sel = col == first
        return (jnp.where(is_sel, 0.0, scores_max),
                jnp.where(is_sel, 1.0, mask_k_all))

    carry = (scores, jnp.zeros_like(scores))
    if trac_att_k <= 4:                                # small k: unroll
        for _ in range(trac_att_k):
            carry = select_step(carry)
    else:                                              # large k: bound live ranges
        carry = lax.fori_loop(0, trac_att_k, lambda i, c: select_step(c), carry)
    _, mask_k_all = carry
    # Selected one-hots are disjoint -> reconstruct instead of carrying it.
    scores_k_sum = scores * mask_k_all

    if use_complement_mask:            # trac_att_k > max_length - trac_att_k
        mask_k_r_all = 1.0 - mask_k_all
        if padded:
            mask_k_r_all = jnp.where(kvalid, mask_k_r_all, 0.0)
    else:
        # reference never updates scores_min -> k identical argmin one-hots
        sc = jnp.where(kvalid, scores, 2.0) if padded else scores
        mnval = jnp.min(sc, axis=-1, keepdims=True)
        first_min = jnp.min(jnp.where(sc == mnval, col, S),
                            axis=-1, keepdims=True)
        mask_k_r_all = jnp.where(col == first_min, float(trac_att_k), 0.0)

    m = mask_ref[0] * mask_k_r_all                     # [tq,1] * [tq,S]
    noise_num = jnp.sum(scores * m)
    noise_den = jnp.sum(m)

    # masked re-softmax of the selected scores, then the context matmul.
    et = jnp.exp(scores_k_sum)                         # values in [0, 1]
    if padded:
        et = jnp.where(kvalid, et, 0.0)
    fs = (et * pl.reciprocal(jnp.sum(et, axis=-1, keepdims=True), approx=True)) * m

    scores_ref[0, 0] = fs.astype(scores_ref.dtype)     # bf16 writeback
    ctx_ref[0] = jnp.dot(fs.astype(jnp.bfloat16), v,   # final-layout column block
                         preferred_element_type=jnp.float32)

    # Pack the two scalar partials into lanes 0/1; accumulate over q-tiles in
    # the resident (b, h) output block.
    lane = lax.broadcasted_iota(jnp.int32, (1, 128), 1)
    packed = (jnp.where(lane == 0, noise_num, 0.0)
              + jnp.where(lane == 1, noise_den, 0.0))

    @pl.when(qi == 0)
    def _init_sums():
        sums_ref[0, 0] = packed

    @pl.when(qi > 0)
    def _acc_sums():
        sums_ref[0, 0] += packed


# --------------------------------------------------------------------------
# Wrapper
# --------------------------------------------------------------------------
def attention_forward(seq1, seq2, mask, wq, wk, wv, *, head, bert_dim,
                      attention_dim, trac_att_k, max_length):
    B, S, D = seq1.shape
    assert D == bert_dim and S == max_length
    assert attention_dim % head == 0
    split = attention_dim // head
    split_pad = _round_up(split, 128)       # lane-aligned per-head width
    A_pad = head * split_pad
    S_pad = _round_up(S, 128)               # lane/sublane-aligned sequence

    tq_target, vmem_limit = _tpu_budget()
    tq = tq_target if S_pad % tq_target == 0 else 128
    nqt = S_pad // tq
    tproj = next(t for t in (512, 256, 128) if S_pad % t == 0)
    nrt = S_pad // tproj
    heads_per_chunk = min(head, max(1, 256 // split_pad))

    bf = jnp.bfloat16

    def pad_seq(x):
        x = x.astype(bf)
        if S_pad != S:
            x = jnp.pad(x, ((0, 0), (0, S_pad - S), (0, 0)))
        return x

    def pad_w(w):
        w = w.astype(bf).reshape(D, head, split)
        if split_pad != split:
            w = jnp.pad(w, ((0, 0), (0, 0), (0, split_pad - split)))
        return w.reshape(D, A_pad)

    seq1_p, seq2_p = pad_seq(seq1), pad_seq(seq2)
    wq_p, wk_p, wv_p = pad_w(wq), pad_w(wk), pad_w(wv)
    mask_p = mask.astype(jnp.float32)
    if S_pad != S:
        mask_p = jnp.pad(mask_p, ((0, 0), (0, S_pad - S)))
    mask_p = mask_p[:, :, None]

    # ---- projection pallas_call (head-major bf16 Q/K/V) ----
    proj = functools.partial(_project_kernel, head=head, split_pad=split_pad,
                             heads_per_chunk=heads_per_chunk)
    qkv_shape = jax.ShapeDtypeStruct((B, head, S_pad, split_pad), bf)
    qkv_spec = pl.BlockSpec((1, head, tproj, split_pad),
                            lambda b, r: (b, 0, r, 0))
    w_spec = pl.BlockSpec((D, A_pad), lambda b, r: (0, 0))
    seq_spec = pl.BlockSpec((1, tproj, D), lambda b, r: (b, r, 0))

    q_hm, k_hm, v_hm = pl.pallas_call(
        proj,
        grid=(B, nrt),
        in_specs=[seq_spec, seq_spec, w_spec, w_spec, w_spec],
        out_specs=(qkv_spec, qkv_spec, qkv_spec),
        out_shape=(qkv_shape, qkv_shape, qkv_shape),
        compiler_params=pltpu.CompilerParams(
            dimension_semantics=("parallel", "parallel"),
            vmem_limit_bytes=vmem_limit),
    )(seq1_p, seq2_p, wq_p, wk_p, wv_p)

    # ---- attention pallas_call ----
    attn = functools.partial(
        _attention_kernel, s_real=S,
        inv_sqrt_bert=1.0 / math.sqrt(bert_dim), trac_att_k=trac_att_k,
        use_complement_mask=(trac_att_k > max_length - trac_att_k))

    scores_p, ctx_p, sums = pl.pallas_call(
        attn,
        grid=(B, head, nqt),
        in_specs=[
            pl.BlockSpec((1, 1, tq, split_pad), lambda b, h, qi: (b, h, qi, 0)),
            pl.BlockSpec((1, 1, S_pad, split_pad), lambda b, h, qi: (b, h, 0, 0)),
            pl.BlockSpec((1, 1, S_pad, split_pad), lambda b, h, qi: (b, h, 0, 0)),
            pl.BlockSpec((1, tq, 1), lambda b, h, qi: (b, qi, 0)),
        ],
        out_specs=(
            pl.BlockSpec((1, 1, tq, S_pad), lambda b, h, qi: (h, b, qi, 0)),
            pl.BlockSpec((1, tq, split_pad), lambda b, h, qi: (b, qi, h)),
            pl.BlockSpec((1, 1, 1, 128), lambda b, h, qi: (b, h, 0, 0)),
        ),
        out_shape=(
            jax.ShapeDtypeStruct((head, B, S_pad, S_pad), bf),      # scores (bf16)
            jax.ShapeDtypeStruct((B, S_pad, A_pad), jnp.float32),   # context
            jax.ShapeDtypeStruct((B, head, 1, 128), jnp.float32),   # noise partials
        ),
        compiler_params=pltpu.CompilerParams(
            dimension_semantics=("parallel", "parallel", "arbitrary"),
            vmem_limit_bytes=vmem_limit),
    )(q_hm, k_hm, v_hm, mask_p)

    # Un-pad to the module's shapes (all of this is a no-op when S and split are
    # already 128-aligned; `scores` is intentionally left in bf16).
    scores = scores_p if S_pad == S else scores_p[:, :, :S, :S]
    ctx = ctx_p if S_pad == S else ctx_p[:, :S]
    if split_pad != split:
        ctx = ctx.reshape(B, S, head, split_pad)[..., :split]
    context_out = ctx.reshape(B, S, attention_dim)
    scores_noise_weight_sum = jnp.sum(sums[..., 0]) / jnp.sum(sums[..., 1])
    return context_out, context_out, scores, scores_noise_weight_sum


# --------------------------------------------------------------------------
# Pure-JAX reference (bf16-matched matmul operands so the discrete top-k /
# argmin selections agree with the kernel; element-wise math is f32).
# --------------------------------------------------------------------------
def attention_reference(seq1, seq2, mask, wq, wk, wv, *, head, bert_dim,
                        attention_dim, trac_att_k, max_length):
    B, S, _ = seq1.shape
    split = attention_dim // head
    bf = jnp.bfloat16

    def proj(x, w):
        y = jnp.einsum('bsd,da->bsa', x.astype(bf), w.astype(bf),
                       preferred_element_type=jnp.float32)
        return y.astype(bf)

    def to_heads(x):
        return jnp.transpose(x.reshape(B, S, head, split), (2, 0, 1, 3))

    q = to_heads(proj(seq1, wq))
    k = to_heads(proj(seq2, wk))
    v = to_heads(proj(seq2, wv))
    s = jnp.einsum('hbqe,hbke->hbqk', q, k, preferred_element_type=jnp.float32)
    s = jnp.tanh(s) / (bert_dim ** 0.5)
    scores = jax.nn.softmax(s, axis=-1)

    scores_max = scores
    mask_k_all = jnp.zeros_like(scores)
    scores_k_sum = jnp.zeros_like(scores)
    for _ in range(trac_att_k):
        one_hot = jax.nn.one_hot(jnp.argmax(scores_max, axis=-1), S,
                                 dtype=scores.dtype)
        sk = scores * one_hot
        scores_k_sum = scores_k_sum + sk
        mask_k_all = mask_k_all + one_hot
        scores_max = scores_max - sk
    one_hot_min = jax.nn.one_hot(jnp.argmin(scores, axis=-1), S,
                                 dtype=scores.dtype)
    if trac_att_k > max_length - trac_att_k:
        mask_k_r_all = 1.0 - mask_k_all
    else:
        mask_k_r_all = trac_att_k * one_hot_min
    m = mask[None, :, :, None] * mask_k_r_all
    noise_sum = jnp.sum(scores * m) / jnp.sum(m)
    fs = jax.nn.softmax(scores_k_sum, axis=-1) * m
    ctx = jnp.einsum('hbqk,hbke->hbqe', fs.astype(bf), v,
                     preferred_element_type=jnp.float32)
    context_out = jnp.transpose(ctx, (1, 2, 0, 3)).reshape(B, S, attention_dim)
    return context_out, context_out, fs, noise_sum


if __name__ == "__main__":
    B, S, D = 2, 8, 32          # batch, max_length (seq), bert_dim
    A, head = 16, 2             # attention_dim, heads

    key = jax.random.PRNGKey(0)
    k1, k2, k3, k4, k5, k6 = jax.random.split(key, 6)
    seq1 = jax.random.normal(k1, (B, S, D), jnp.float32)
    seq2 = jax.random.normal(k2, (B, S, D), jnp.float32)
    wq = jax.random.normal(k3, (D, A), jnp.float32) / (D ** 0.5)
    wk = jax.random.normal(k4, (D, A), jnp.float32) / (D ** 0.5)
    wv = jax.random.normal(k5, (D, A), jnp.float32) / (D ** 0.5)
    mask = (jax.random.uniform(k6, (B, S)) > 0.2).astype(jnp.float32)

    # trac_att_k=2 exercises the argmin branch (+ unrolled top-k);
    # trac_att_k=5 exercises the complement-mask branch (+ fori_loop top-k).
    for trac_att_k in (2, 5):
        cfg = dict(head=head, bert_dim=D, attention_dim=A,
                   trac_att_k=trac_att_k, max_length=S)

        ctx, ctx2, scores, noise_sum = attention_forward(
            seq1, seq2, mask, wq, wk, wv, **cfg)
        jax.block_until_ready((ctx, scores, noise_sum))

        rctx, _, rscores, rnoise = attention_reference(
            seq1, seq2, mask, wq, wk, wv, **cfg)

        assert jnp.allclose(ctx, rctx, atol=2e-2, rtol=2e-2), "context mismatch"
        assert jnp.allclose(scores.astype(jnp.float32), rscores,
                            atol=2e-2, rtol=2e-2), "scores mismatch"
        assert jnp.allclose(noise_sum, rnoise, atol=2e-2, rtol=2e-2), \
            "noise sum mismatch"

    print("KERNEL_OK")
</pallas_src>

<mosaic_0001>
module attributes {stable_mosaic.version = 11 : i64} {
  func.func @_project_kernel(%arg0: i32, %arg1: i32, %arg2: memref<1x128x32xbf16, #tpu.memory_space<vmem>>, %arg3: memref<1x128x32xbf16, #tpu.memory_space<vmem>>, %arg4: memref<32x256xbf16, #tpu.memory_space<vmem>>, %arg5: memref<32x256xbf16, #tpu.memory_space<vmem>>, %arg6: memref<32x256xbf16, #tpu.memory_space<vmem>>, %arg7: memref<1x2x128x128xbf16, #tpu.memory_space<vmem>>, %arg8: memref<1x2x128x128xbf16, #tpu.memory_space<vmem>>, %arg9: memref<1x2x128x128xbf16, #tpu.memory_space<vmem>>) attributes {dimension_semantics = [#tpu.dimension_semantics<parallel>, #tpu.dimension_semantics<parallel>], iteration_bounds = array<i64: 2, 1>, scalar_prefetch = 0 : i64, scratch_operands = 0 : i64, tpu.core_type = #tpu.core_type<tc>, window_params = [{transform_indices = @transform_0, window_bounds = array<i64: 1, 128, 32>}, {transform_indices = @transform_1, window_bounds = array<i64: 1, 128, 32>}, {pipeline_mode = #tpu.pipeline_mode<synchronous>, transform_indices = @transform_2, window_bounds = array<i64: 32, 256>}, {pipeline_mode = #tpu.pipeline_mode<synchronous>, transform_indices = @transform_3, window_bounds = array<i64: 32, 256>}, {pipeline_mode = #tpu.pipeline_mode<synchronous>, transform_indices = @transform_4, window_bounds = array<i64: 32, 256>}, {transform_indices = @transform_5, window_bounds = array<i64: 1, 2, 128, 128>}, {transform_indices = @transform_6, window_bounds = array<i64: 1, 2, 128, 128>}, {transform_indices = @transform_7, window_bounds = array<i64: 1, 2, 128, 128>}]} {
    %c0 = arith.constant 0 : index
    %c0_0 = arith.constant 0 : index
    %c0_1 = arith.constant 0 : index
    %0 = vector.load %arg2[%c0, %c0_0, %c0_1] : memref<1x128x32xbf16, #tpu.memory_space<vmem>>, vector<1x128x32xbf16>
    %1 = vector.shape_cast %0 : vector<1x128x32xbf16> to vector<128x32xbf16>
    %c0_2 = arith.constant 0 : index
    %c0_3 = arith.constant 0 : index
    %c0_4 = arith.constant 0 : index
    %2 = vector.load %arg3[%c0_2, %c0_3, %c0_4] : memref<1x128x32xbf16, #tpu.memory_space<vmem>>, vector<1x128x32xbf16>
    %3 = vector.shape_cast %2 : vector<1x128x32xbf16> to vector<128x32xbf16>
    %c0_5 = arith.constant 0 : index
    %c0_6 = arith.constant 0 : index
    %4 = vector.load %arg4[%c0_5, %c0_6] : memref<32x256xbf16, #tpu.memory_space<vmem>>, vector<32x256xbf16>
    %cst = arith.constant dense<0.000000e+00> : vector<128x256xf32>
    %5 = tpu.matmul %1, %4, %cst {dimension_numbers = #tpu.dot_dimension_numbers<[1], [0], [0], [1], [0, 0, 1, 1], [], []>} : vector<128x32xbf16>, vector<32x256xbf16>, vector<128x256xf32> -> vector<128x256xf32>
    %6 = vector.extract_strided_slice %5 {offsets = [0, 0], sizes = [128, 128], strides = [1, 1]} : vector<128x256xf32> to vector<128x128xf32>
    %7 = arith.truncf %6 : vector<128x128xf32> to vector<128x128xbf16>
    %c0_7 = arith.constant 0 : index
    %c0_8 = arith.constant 0 : index
    %c0_9 = arith.constant 0 : index
    %c0_10 = arith.constant 0 : index
    %8 = vector.load %arg7[%c0_7, %c0_8, %c0_9, %c0_10] : memref<1x2x128x128xbf16, #tpu.memory_space<vmem>>, vector<1x1x128x128xbf16>
    %9 = vector.shape_cast %8 : vector<1x1x128x128xbf16> to vector<128x128xbf16>
    %10 = vector.shape_cast %7 : vector<128x128xbf16> to vector<1x1x128x128xbf16>
    tpu.vector_store %arg7[%c0_7, %c0_8, %c0_9, %c0_10], %10 {strides = array<i32>} : memref<1x2x128x128xbf16, #tpu.memory_space<vmem>>, vector<1x1x128x128xbf16>,
    %11 = vector.extract_strided_slice %5 {offsets = [0, 128], sizes = [128, 128], strides = [1, 1]} : vector<128x256xf32> to vector<128x128xf32>
    %12 = arith.truncf %11 : vector<128x128xf32> to vector<128x128xbf16>
    %c0_11 = arith.constant 0 : index
    %c1 = arith.constant 1 : index
    %c0_12 = arith.constant 0 : index
    %c0_13 = arith.constant 0 : index
    %13 = vector.load %arg7[%c0_11, %c1, %c0_12, %c0_13] : memref<1x2x128x128xbf16, #tpu.memory_space<vmem>>, vector<1x1x128x128xbf16>
    %14 = vector.shape_cast %13 : vector<1x1x128x128xbf16> to vector<128x128xbf16>
    %15 = vector.shape_cast %12 : vector<128x128xbf16> to vector<1x1x128x128xbf16>
    tpu.vector_store %arg7[%c0_11, %c1, %c0_12, %c0_13], %15 {strides = array<i32>} : memref<1x2x128x128xbf16, #tpu.memory_space<vmem>>, vector<1x1x128x128xbf16>,
    %c0_14 = arith.constant 0 : index
    %c0_15 = arith.constant 0 : index
    %16 = vector.load %arg5[%c0_14, %c0_15] : memref<32x256xbf16, #tpu.memory_space<vmem>>, vector<32x256xbf16>
    %cst_16 = arith.constant dense<0.000000e+00> : vector<128x256xf32>
    %17 = tpu.matmul %3, %16, %cst_16 {dimension_numbers = #tpu.dot_dimension_numbers<[1], [0], [0], [1], [0, 0, 1, 1], [], []>} : vector<128x32xbf16>, vector<32x256xbf16>, vector<128x256xf32> -> vector<128x256xf32>
    %18 = vector.extract_strided_slice %17 {offsets = [0, 0], sizes = [128, 128], strides = [1, 1]} : vector<128x256xf32> to vector<128x128xf32>
    %19 = arith.truncf %18 : vector<128x128xf32> to vector<128x128xbf16>
    %c0_17 = arith.constant 0 : index
    %c0_18 = arith.constant 0 : index
    %c0_19 = arith.constant 0 : index
    %c0_20 = arith.constant 0 : index
    %20 = vector.load %arg8[%c0_17, %c0_18, %c0_19, %c0_20] : memref<1x2x128x128xbf16, #tpu.memory_space<vmem>>, vector<1x1x128x128xbf16>
    %21 = vector.shape_cast %20 : vector<1x1x128x128xbf16> to vector<128x128xbf16>
    %22 = vector.shape_cast %19 : vector<128x128xbf16> to vector<1x1x128x128xbf16>
    tpu.vector_store %arg8[%c0_17, %c0_18, %c0_19, %c0_20], %22 {strides = array<i32>} : memref<1x2x128x128xbf16, #tpu.memory_space<vmem>>, vector<1x1x128x128xbf16>,
    %23 = vector.extract_strided_slice %17 {offsets = [0, 128], sizes = [128, 128], strides = [1, 1]} : vector<128x256xf32> to vector<128x128xf32>
    %24 = arith.truncf %23 : vector<128x128xf32> to vector<128x128xbf16>
    %c0_21 = arith.constant 0 : index
    %c1_22 = arith.constant 1 : index
    %c0_23 = arith.constant 0 : index
    %c0_24 = arith.constant 0 : index
    %25 = vector.load %arg8[%c0_21, %c1_22, %c0_23, %c0_24] : memref<1x2x128x128xbf16, #tpu.memory_space<vmem>>, vector<1x1x128x128xbf16>
    %26 = vector.shape_cast %25 : vector<1x1x128x128xbf16> to vector<128x128xbf16>
    %27 = vector.shape_cast %24 : vector<128x128xbf16> to vector<1x1x128x128xbf16>
    tpu.vector_store %arg8[%c0_21, %c1_22, %c0_23, %c0_24], %27 {strides = array<i32>} : memref<1x2x128x128xbf16, #tpu.memory_space<vmem>>, vector<1x1x128x128xbf16>,
    %c0_25 = arith.constant 0 : index
    %c0_26 = arith.constant 0 : index
    %28 = vector.load %arg6[%c0_25, %c0_26] : memref<32x256xbf16, #tpu.memory_space<vmem>>, vector<32x256xbf16>
    %cst_27 = arith.constant dense<0.000000e+00> : vector<128x256xf32>
    %29 = tpu.matmul %3, %28, %cst_27 {dimension_numbers = #tpu.dot_dimension_numbers<[1], [0], [0], [1], [0, 0, 1, 1], [], []>} : vector<128x32xbf16>, vector<32x256xbf16>, vector<128x256xf32> -> vector<128x256xf32>
    %30 = vector.extract_strided_slice %29 {offsets = [0, 0], sizes = [128, 128], strides = [1, 1]} : vector<128x256xf32> to vector<128x128xf32>
    %31 = arith.truncf %30 : vector<128x128xf32> to vector<128x128xbf16>
    %c0_28 = arith.constant 0 : index
    %c0_29 = arith.constant 0 : index
    %c0_30 = arith.constant 0 : index
    %c0_31 = arith.constant 0 : index
    %32 = vector.load %arg9[%c0_28, %c0_29, %c0_30, %c0_31] : memref<1x2x128x128xbf16, #tpu.memory_space<vmem>>, vector<1x1x128x128xbf16>
    %33 = vector.shape_cast %32 : vector<1x1x128x128xbf16> to vector<128x128xbf16>
    %34 = vector.shape_cast %31 : vector<128x128xbf16> to vector<1x1x128x128xbf16>
    tpu.vector_store %arg9[%c0_28, %c0_29, %c0_30, %c0_31], %34 {strides = array<i32>} : memref<1x2x128x128xbf16, #tpu.memory_space<vmem>>, vector<1x1x128x128xbf16>,
    %35 = vector.extract_strided_slice %29 {offsets = [0, 128], sizes = [128, 128], strides = [1, 1]} : vector<128x256xf32> to vector<128x128xf32>
    %36 = arith.truncf %35 : vector<128x128xf32> to vector<128x128xbf16>
    %c0_32 = arith.constant 0 : index
    %c1_33 = arith.constant 1 : index
    %c0_34 = arith.constant 0 : index
    %c0_35 = arith.constant 0 : index
    %37 = vector.load %arg9[%c0_32, %c1_33, %c0_34, %c0_35] : memref<1x2x128x128xbf16, #tpu.memory_space<vmem>>, vector<1x1x128x128xbf16>
    %38 = vector.shape_cast %37 : vector<1x1x128x128xbf16> to vector<128x128xbf16>
    %39 = vector.shape_cast %36 : vector<128x128xbf16> to vector<1x1x128x128xbf16>
    tpu.vector_store %arg9[%c0_32, %c1_33, %c0_34, %c0_35], %39 {strides = array<i32>} : memref<1x2x128x128xbf16, #tpu.memory_space<vmem>>, vector<1x1x128x128xbf16>,
    return
  }
  func.func @transform_0(%arg0: i32, %arg1: i32) -> (i32, i32, i32) {
    %c0_i32 = arith.constant 0 : i32
    %c0_i32_0 = arith.constant 0 : i32
    return %arg0, %arg1, %c0_i32 : i32, i32, i32
  }
  func.func @transform_1(%arg0: i32, %arg1: i32) -> (i32, i32, i32) {
    %c0_i32 = arith.constant 0 : i32
    %c0_i32_0 = arith.constant 0 : i32
    return %arg0, %arg1, %c0_i32 : i32, i32, i32
  }
  func.func @transform_2(%arg0: i32, %arg1: i32) -> (i32, i32) {
    %c0_i32 = arith.constant 0 : i32
    %c0_i32_0 = arith.constant 0 : i32
    %c0_i32_1 = arith.constant 0 : i32
    return %c0_i32, %c0_i32_0 : i32, i32
  }
  func.func @transform_3(%arg0: i32, %arg1: i32) -> (i32, i32) {
    %c0_i32 = arith.constant 0 : i32
    %c0_i32_0 = arith.constant 0 : i32
    %c0_i32_1 = arith.constant 0 : i32
    return %c0_i32, %c0_i32_0 : i32, i32
  }
  func.func @transform_4(%arg0: i32, %arg1: i32) -> (i32, i32) {
    %c0_i32 = arith.constant 0 : i32
    %c0_i32_0 = arith.constant 0 : i32
    %c0_i32_1 = arith.constant 0 : i32
    return %c0_i32, %c0_i32_0 : i32, i32
  }
  func.func @transform_5(%arg0: i32, %arg1: i32) -> (i32, i32, i32, i32) {
    %c0_i32 = arith.constant 0 : i32
    %c0_i32_0 = arith.constant 0 : i32
    %c0_i32_1 = arith.constant 0 : i32
    return %arg0, %c0_i32, %arg1, %c0_i32_0 : i32, i32, i32, i32
  }
  func.func @transform_6(%arg0: i32, %arg1: i32) -> (i32, i32, i32, i32) {
    %c0_i32 = arith.constant 0 : i32
    %c0_i32_0 = arith.constant 0 : i32
    %c0_i32_1 = arith.constant 0 : i32
    return %arg0, %c0_i32, %arg1, %c0_i32_0 : i32, i32, i32, i32
  }
  func.func @transform_7(%arg0: i32, %arg1: i32) -> (i32, i32, i32, i32) {
    %c0_i32 = arith.constant 0 : i32
    %c0_i32_0 = arith.constant 0 : i32
    %c0_i32_1 = arith.constant 0 : i32
    return %arg0, %c0_i32, %arg1, %c0_i32_0 : i32, i32, i32, i32
  }
}

</mosaic_0001>

<bundles_post_ra>
// kernel: tpu_custom_call.1
= control target key start
LH: loop header
LB: loop body
LE: loop exit
PB: predicated region body
PF: predicated region fallthrough
CT: control target
= control target key end

     0   :  { %s2923_s0 = inlined_call_operand.vmem [shape: bf16[2,128,32], index: 0, kind: input, shape index: {}]   ;;  %s2924_s1 = inlined_call_operand.vmem [shape: bf16[2,128,32], index: 1, kind: input, shape index: {}]   ;;  %s2925_s2 = inlined_call_operand.vmem [shape: bf16[32,256], index: 2, kind: input, shape index: {}]   ;;  %s2926_s3 = inlined_call_operand.vmem [shape: bf16[32,256], index: 3, kind: input, shape index: {}]   ;;  %s2927_s4 = inlined_call_operand.vmem [shape: bf16[32,256], index: 4, kind: input, shape index: {}]   ;;  %s2928_s5 = inlined_call_operand.hbm [shape: bf16[2,2,128,128], index: 5, kind: output, shape index: {0}]   ;;  %s2929_s6 = inlined_call_operand.hbm [shape: bf16[2,2,128,128], index: 6, kind: output, shape index: {1}]   ;;  %s2930_s7 = inlined_call_operand.hbm [shape: bf16[2,2,128,128], index: 7, kind: output, shape index: {2}]  }
   0x1   :  { %2936 = sst [smem:[#allocation9_spill]] %s2923_s0 }
   0x2   :  { %13 = vsyncpa [#allocation3], 0 }
   0x3   :  { %15 = vsyncpa [#allocation3 + $0x1], 0 }
   0x4   :  { %16 = vsyncpa [#allocation5], 0 }
   0x5   :  { %18 = vsyncpa [#allocation5 + $0x1], 0  ;;  %s2547_s24 = smov 0   ;;  %s2549_s25 = smov 0  }
   0x6   :  { %s2551_s26 = smov 0   ;;  %s2553_s27 = smov 0  }
   0x7   :  { %s2555_s28 = smov 0   ;;  %s2557_s29 = smov 0  }
   0x8 LB: > { %s1650_s30 = sadd.s32 4294967295, %s2499_s29   ;;  %s2931_s8 = sadd.s32 4294967294, %s2499_s29   ;;  %s2499_s29 = sphi %s2557_s29, %s24_s29   ;;  %s2495_s28 = sphi %s2555_s28, %s2947_s28   ;;  %s2491_s27 = sphi %s2553_s27, %s2946_s27   ;;  %s2487_s26 = sphi %s2551_s26, %s2945_s26   ;;  %s2483_s25 = sphi %s2549_s25, %s2944_s25   ;;  %s2479_s24 = sphi %s2547_s24, %s2943_s24  }
   0x9   : > { %s36_s9 = sadd.s32 1, %s2495_s28  ;;  %s164_s10 = sadd.s32 1, %s2487_s26 }
   0xa   : > { %p38_p0 = scmp.ge.s32.totalorder %s36_s9, 2  ;;  %p174_p1 = scmp.ne.s32.totalorder %s2487_s26, %s2483_s25 }
   0xb   : > { %p175_p2 = scmp.eq.s32.totalorder %s1650_s30, 1  ;;  %p180_p3 = scmp.ne.s32.totalorder %s2483_s25, %s2479_s24 }
   0xc   : > { %s2949_s9 = smov (%p38_p0, %s36_s9), 0  ;;  %p181_p5 = scmp.eq.s32.totalorder %s2931_s8, 1 }
   0xd   : > { %p2589_p4 = por %p175_p2, %p174_p1  ;;  %s159_s12 = ssub.s32 %s2495_s28, %s2949_s9 }
   0xe   : > { %p1654_p6 = scmp.ge.s32.totalorder %s2499_s29, 1  ;;  %p162_p7 = scmp.eq.s32.totalorder %s159_s12, 0 }
   0xf   : > { %p2598_p8 = por %p181_p5, %p180_p3  ;;  %p290_p9 = scmp.lt.s32.totalorder %s2499_s29, 3 }
  0x10   : > { %s2604_s14 = scalar_select %p162_p7, %s2487_s26, %s164_s10  }
  0x11   : > { %p291_p10 = pnand %p1654_p6, %p290_p9 }
  0x12   : > { %v2327_v0 = vld [vmem:[%s2925_s2 + $0x4] ss:$8 sps:$4 sm:$0xff] (!%p291_p10)   ;;  %p346_p11 = scmp.lt.s32.totalorder (!%p291_p10), %s2491_s27, 1  ;;  %v2329_v1 = vld [vmem:[%s2925_s2] ss:$8 sps:$4 sm:$0xff] (!%p291_p10)   ;;  %v2501_v2 = vmov (!%p291_p10), 0  }
  0x13   : > { %294 = sbr.rel (%p291_p10) target bundleno = 374 (0x176), region = 40  ;;  %522 = vmatprep.mubr.bf16.mxu0 (!%p291_p10), %v2501_v2  ;;  %562 = vmatprep.mubr.bf16.mxu1 (!%p291_p10), %v2501_v2  ;;  %v2330_v3 = vld [vmem:[%s2925_s2 + $0x14] ss:$8 sps:$4 sm:$0xff] (!%p291_p10)   ;;  %v2332_v4 = vld [vmem:[%s2925_s2 + $0x10] ss:$8 sps:$4 sm:$0xff] (!%p291_p10)   ;;  %s2939_s0 = sld [smem:[#allocation9_spill]] (!%p291_p10) }
  0x14   : > { %490 = vmatprep.subr.bf16.mxu0 (!%p291_p10), %v2327_v0  ;;  %2255 = vmatprep.subr.bf16.mxu1 (!%p291_p10), %v2327_v0  ;;  %v2337_v5 = vld [vmem:[%s2926_s3 + $0x4] ss:$8 sps:$4 sm:$0xff] (!%p291_p10)   ;;  %v2335_v6 = vld [vmem:[%s2926_s3] ss:$8 sps:$4 sm:$0xff] (!%p291_p10)   ;;  %vm465_vm0 = vcmask (!%p291_p10), 261120   ;;  %s2742_s15 = sshll.u32 (!%p291_p10), %s2491_s27, 11 }
  0x15   : > { %491 = vmatpush1.bf16.msra.mxu0 (!%p291_p10), %v2329_v1  ;;  %2257 = vmatpush1.bf16.msra.mxu1 (!%p291_p10), %v2329_v1  ;;  %v2338_v7 = vld [vmem:[%s2927_s4] ss:$8 sps:$4 sm:$0xff] (!%p291_p10)   ;;  %v2340_v8 = vld [vmem:[%s2927_s4 + $0x4] ss:$8 sps:$4 sm:$0xff] (!%p291_p10)   ;;  %v2345_v12 = vld [vmem:[%s2926_s3 + $0x10] ss:$8 sps:$4 sm:$0xff] (!%p291_p10)   ;;  %s2749_s20 = scalar_lea.hbm (!%p291_p10), %s2928_s5, %s2742_s15 }
  0x16   : > { %492 = vmatprep.subr.bf16.mxu0 (!%p291_p10), %v2330_v3  ;;  %2256 = vmatprep.subr.bf16.mxu1 (!%p291_p10), %v2330_v3  ;;  %v2347_v13 = vld [vmem:[%s2926_s3 + $0x14] ss:$8 sps:$4 sm:$0xff] (!%p291_p10)   ;;  %v2348_v14 = vld [vmem:[%s2927_s4 + $0x10] ss:$8 sps:$4 sm:$0xff] (!%p291_p10)   ;;  %s2502_s23 = smov (!%p291_p10), [#allocation2]  }
  0x17   : > { %v2350_v15 = vld [vmem:[%s2927_s4 + $0x14] ss:$8 sps:$4 sm:$0xff] (!%p291_p10)  }
  0x19   : > { %493 = vmatpush1.bf16.msra.mxu0 (!%p291_p10), %v2332_v4  ;;  %2258 = vmatpush1.bf16.msra.mxu1 (!%p291_p10), %v2332_v4 }
  0x1a   : > { %s2619_s21 = scalar_select %p346_p11, %s2491_s27, 1  ;;  %852 = vmatprep.subr.bf16.mxu1 %v2337_v5  ;;  %1150 = vmatprep.subr.bf16.mxu0 %v2340_v8 }
  0x1c   : > { %s1869_s10 = sshll.u32 %s2619_s21, 6  ;;  %s2365_s21 = sshll.u32 %s2502_s23, 4  ;;  %s2366_s21 = int_to_ptr.vmem [resolvable:$false] %s2365_s21 }
  0x1d   : > { %s2631_s18 = scalar_lea.vmem %s2939_s0, %s1869_s10  ;;  %s2665_s8 = scalar_lea.vmem %s2924_s1, %s1869_s10 }
  0x1e   : > { %v2333_v9 = vld [vmem:[%s2631_s18] sm:$0xff]   ;;  %v2341_v11 = vld [vmem:[%s2631_s18 + $0x8] sm:$0xff]   ;;  %v2343_v17 = vld [vmem:[%s2631_s18 + $0x10] sm:$0xff]   ;;  %s328_s10 = sand.u32 1, %s2483_s25  }
  0x1f   : > { %v2334_v10 = vld [vmem:[%s2631_s18 + $0x20] sm:$0xff]   ;;  %1674 = vmatmul.mubr.msk.bf16.vlgmr.msra.gmra.mrb[0].mxu0 %vm465_vm0, %v2333_v9  ;;  %v2342_v16 = vld [vmem:[%s2631_s18 + $0x28] sm:$0xff]   ;;  %v2344_v18 = vld [vmem:[%s2631_s18 + $0x30] sm:$0xff]   ;;  %s2759_s27 = scalar_lea.sflag [#allocation3], %s328_s10 }
  0x20   : > { %1678 = vmatmul.mubr.msk.bf16.vlgmr.msra.gmra.mrb[0].mxu1 %vm465_vm0, %v2334_v10  ;;  %1151 = vmatpush1.bf16.msra.mxu0 %v2338_v7  ;;  %v2351_v19 = vld [vmem:[%s2631_s18 + $0x18] sm:$0xff]   ;;  %v2353_v21 = vld [vmem:[%s2665_s8] sm:$0xff]   ;;  %v2354_v22 = vld [vmem:[%s2665_s8 + $0x8] sm:$0xff]  }
  0x21   : > { %853 = vmatpush1.bf16.msra.mxu1 %v2335_v6  ;;  %532 = vmatprep.mubr.bf16.mxu0 %v2501_v2  ;;  %v2352_v20 = vld [vmem:[%s2631_s18 + $0x38] sm:$0xff]   ;;  %v2355_v23 = vld [vmem:[%s2665_s8 + $0x10] sm:$0xff]   ;;  %v2357_v25 = vld [vmem:[%s2665_s8 + $0x20] sm:$0xff]   ;;  %s2724_s18 = sshll.u32 %s328_s10, 7 }
  0x22   : > { %572 = vmatprep.mubr.bf16.mxu1 %v2501_v2  ;;  %854 = vmatprep.subr.bf16.mxu1 %v2347_v13  ;;  %v2356_v24 = vld [vmem:[%s2665_s8 + $0x18] sm:$0xff]   ;;  %v2358_v26 = vld [vmem:[%s2665_s8 + $0x28] sm:$0xff]   ;;  %v2359_v27 = vld [vmem:[%s2665_s8 + $0x30] sm:$0xff]   ;;  %s2727_s12 = scalar_lea.vmem [#allocation2], %s2724_s18 }
  0x23   : > { %1152 = vmatprep.subr.bf16.mxu0 %v2350_v15  ;;  %v2360_v28 = vld [vmem:[%s2665_s8 + $0x38] sm:$0xff]   ;;  %s1450_s16 = sshll.u32 %s2727_s12, 4  ;;  %s2367_s8 = scalar_lea.vmem %s2366_s21, 4096  ;;  %s2751_s16 = int_to_ptr.vmem [resolvable:$true] %s1450_s16 }
  0x24   : > { %1153 = vmatpush1.bf16.msra.mxu0 %v2348_v14  ;;  %s2361_s22 = scalar_lea.vmem %s2751_s16, 2048  ;;  %p2368_p1 = scmp.lt.s32.totalorder %s2751_s16, %s2366_s21 }
  0x25   : > { %855 = vmatpush1.bf16.msra.mxu1 %v2345_v12  ;;  %p2362_p12 = scmp.ne.s32.totalorder %s2751_s16, %s2361_s22  ;;  %p2369_p2 = scmp.lt.s32.totalorder %s2367_s8, %s2361_s22 }
  0x27   : > { %1675 = vmatmul.mubr.msk.bf16.gmra.mrb[4].mxu0 %vm465_vm0, %v2341_v11  ;;  %p2363_p13 = pnand %p2362_p12, %p2589_p4  ;;  %p2370_p3 = por %p2369_p2, %p2368_p1 }
  0x28   : > { %1679 = vmatmul.mubr.msk.bf16.gmra.mrb[4].mxu1 %vm465_vm0, %v2342_v16  ;;  %542 = vmatprep.mubr.bf16.mxu0 %v2501_v2 }
  0x29   : > { %582 = vmatprep.mubr.bf16.mxu1 %v2501_v2  ;;  %p2364_p0 = pneg %p2363_p13 }
  0x2b   : > { %p2371_p5 = pnand %p2370_p3, %p2364_p0 }
  0x2f   : > { %1676 = vmatmul.mubr.msk.bf16.gmra.mrb[8].mxu0 %vm465_vm0, %v2343_v17 }
  0x30   : > { %1680 = vmatmul.mubr.msk.bf16.gmra.mrb[8].mxu1 %vm465_vm0, %v2344_v18  ;;  %552 = vmatprep.mubr.bf16.mxu0 %v2501_v2 }
  0x31   : > { %592 = vmatprep.mubr.bf16.mxu1 %v2501_v2 }
  0x37   : > { %1677 = vmatmul.mubr.msk.bf16.gmra.mrb[12].mxu0 %vm465_vm0, %v2351_v19 }
  0x38   : > { %1681 = vmatmul.mubr.msk.bf16.gmra.mrb[12].mxu1 %vm465_vm0, %v2352_v20  ;;  %1182 = vmatprep.mubr.bf16.mxu0 %v2501_v2 }
  0x39   : > { %884 = vmatprep.mubr.bf16.mxu1 %v2501_v2 }
  0x3f   : > { %1802 = vmatmul.mubr.msk.bf16.vlgmr.msra.gmra.mrb[16].mxu0 %vm465_vm0, %v2353_v21 }
  0x40   : > { %1742 = vmatmul.mubr.msk.bf16.vlgmr.msra.gmra.mrb[16].mxu1 %vm465_vm0, %v2353_v21  ;;  %1192 = vmatprep.mubr.bf16.mxu0 %v2501_v2 }
  0x41   : > { %894 = vmatprep.mubr.bf16.mxu1 %v2501_v2 }
  0x47   : > { %1803 = vmatmul.mubr.msk.bf16.gmra.mrb[20].mxu0 %vm465_vm0, %v2354_v22 }
  0x48   : > { %1743 = vmatmul.mubr.msk.bf16.gmra.mrb[20].mxu1 %vm465_vm0, %v2354_v22  ;;  %1202 = vmatprep.mubr.bf16.mxu0 %v2501_v2 }
  0x49   : > { %904 = vmatprep.mubr.bf16.mxu1 %v2501_v2 }
  0x4f   : > { %1804 = vmatmul.mubr.msk.bf16.gmra.mrb[24].mxu0 %vm465_vm0, %v2355_v23 }
  0x50   : > { %1744 = vmatmul.mubr.msk.bf16.gmra.mrb[24].mxu1 %vm465_vm0, %v2355_v23  ;;  %1212 = vmatprep.mubr.bf16.mxu0 %v2501_v2 }
  0x51   : > { %914 = vmatprep.mubr.bf16.mxu1 %v2501_v2 }
  0x57   : > { %1805 = vmatmul.mubr.msk.bf16.gmra.mrb[28].mxu0 %vm465_vm0, %v2356_v24 }
  0x58   : > { %1745 = vmatmul.mubr.msk.bf16.gmra.mrb[28].mxu1 %vm465_vm0, %v2356_v24  ;;  %1222 = vmatprep.mubr.bf16.mxu0 %v2501_v2 }
  0x59   : > { %924 = vmatprep.mubr.bf16.mxu1 %v2501_v2 }
  0x5f   : > { %1806 = vmatmul.mubr.msk.bf16.gmra.mrb[32].mxu0 %vm465_vm0, %v2357_v25 }
  0x60   : > { %1746 = vmatmul.mubr.msk.bf16.gmra.mrb[32].mxu1 %vm465_vm0, %v2357_v25  ;;  %1232 = vmatprep.mubr.bf16.mxu0 %v2501_v2 }
  0x61   : > { %934 = vmatprep.mubr.bf16.mxu1 %v2501_v2 }
  0x67   : > { %1807 = vmatmul.mubr.msk.bf16.gmra.mrb[36].mxu0 %vm465_vm0, %v2358_v26 }
  0x68   : > { %1747 = vmatmul.mubr.msk.bf16.gmra.mrb[36].mxu1 %vm465_vm0, %v2358_v26  ;;  %1242 = vmatprep.mubr.bf16.mxu0 %v2501_v2 }
  0x69   : > { %944 = vmatprep.mubr.bf16.mxu1 %v2501_v2 }
  0x6f   : > { %1808 = vmatmul.mubr.msk.bf16.gmra.mrb[40].mxu0 %vm465_vm0, %v2359_v27 }
  0x70   : > { %1748 = vmatmul.mubr.msk.bf16.gmra.mrb[40].mxu1 %vm465_vm0, %v2359_v27  ;;  %1252 = vmatprep.mubr.bf16.mxu0 %v2501_v2 }
  0x71   : > { %954 = vmatprep.mubr.bf16.mxu1 %v2501_v2 }
  0x77   : > { %1809 = vmatmul.mubr.msk.bf16.gmra.mrb[44].mxu0 %vm465_vm0, %v2360_v28 }
  0x78   : > { %1749 = vmatmul.mubr.msk.bf16.gmra.mrb[44].mxu1 %vm465_vm0, %v2360_v28 }
  0xf2   : > { %v524_v29 = vpop.f32.mrb[0].mxu0 }
  0xf3   : > { %v564_v30 = vpop.f32.mrb[0].mxu1  ;;  %v526_v31 = vpop.f32.mrb[1].mxu0 }
  0xf4   : > { %v566_v32 = vpop.f32.mrb[1].mxu1  ;;  %v528_v33 = vpop.f32.mrb[2].mxu0 }
  0xf5   : > { %v568_v34 = vpop.f32.mrb[2].mxu1  ;;  %v1973_v35 = vpack.c.bf16 %v528_v33, %v524_v29  ;;  %v530_v37 = vpop.f32.mrb[3].mxu0 }
  0xf6   : > { %v1993_v36 = vpack.c.bf16 %v568_v34, %v564_v30  ;;  %v570_v38 = vpop.f32.mrb[3].mxu1  ;;  %v2013_v39 = vpack.c.bf16 %v530_v37, %v526_v31 }
  0xf7   : > { %v2033_v40 = vpack.c.bf16 %v570_v38, %v566_v32  ;;  %1974 = vst [vmem:[%s2727_s12] sm:$0xff] %v1973_v35  }
  0xf8   : > { %2213 = vst [vmem:[%s2727_s12 + $0x20] sm:$0xff] %v1993_v36   ;;  %2217 = vst [vmem:[%s2727_s12 + $0x40] sm:$0xff] %v2013_v39  }
  0xf9   : > { %2221 = vst [vmem:[%s2727_s12 + $0x60] sm:$0xff] %v2033_v40  }
  0xfa   : > { %v534_v41 = vpop.f32.mrb[4].mxu0 }
  0xfb   : > { %v574_v42 = vpop.f32.mrb[4].mxu1  ;;  %v536_v43 = vpop.f32.mrb[5].mxu0 }
  0xfc   : > { %v576_v44 = vpop.f32.mrb[5].mxu1  ;;  %v538_v45 = vpop.f32.mrb[6].mxu0 }
  0xfd   : > { %v578_v46 = vpop.f32.mrb[6].mxu1  ;;  %v1978_v47 = vpack.c.bf16 %v538_v45, %v534_v41  ;;  %v540_v49 = vpop.f32.mrb[7].mxu0 }
  0xfe   : > { %v1998_v48 = vpack.c.bf16 %v578_v46, %v574_v42  ;;  %v580_v50 = vpop.f32.mrb[7].mxu1  ;;  %v2018_v51 = vpack.c.bf16 %v540_v49, %v536_v43 }
  0xff   : > { %v2038_v52 = vpack.c.bf16 %v580_v50, %v576_v44  ;;  %2210 = vst [vmem:[%s2727_s12 + $0x8] sm:$0xff] %v1978_v47  }
 0x100   : > { %2214 = vst [vmem:[%s2727_s12 + $0x28] sm:$0xff] %v1998_v48   ;;  %2218 = vst [vmem:[%s2727_s12 + $0x48] sm:$0xff] %v2018_v51  }
 0x101   : > { %2222 = vst [vmem:[%s2727_s12 + $0x68] sm:$0xff] %v2038_v52  }
 0x102   : > { %v544_v53 = vpop.f32.mrb[8].mxu0 }
 0x103   : > { %v584_v54 = vpop.f32.mrb[8].mxu1  ;;  %v546_v55 = vpop.f32.mrb[9].mxu0 }
 0x104   : > { %v586_v56 = vpop.f32.mrb[9].mxu1  ;;  %v548_v57 = vpop.f32.mrb[10].mxu0 }
 0x105   : > { %v588_v58 = vpop.f32.mrb[10].mxu1  ;;  %v1983_v59 = vpack.c.bf16 %v548_v57, %v544_v53  ;;  %v550_v61 = vpop.f32.mrb[11].mxu0 }
 0x106   : > { %v2003_v60 = vpack.c.bf16 %v588_v58, %v584_v54  ;;  %v590_v62 = vpop.f32.mrb[11].mxu1  ;;  %v2023_v63 = vpack.c.bf16 %v550_v61, %v546_v55 }
 0x107   : > { %v2043_v0 = vpack.c.bf16 %v590_v62, %v586_v56  ;;  %2211 = vst [vmem:[%s2727_s12 + $0x10] sm:$0xff] %v1983_v59  }
 0x108   : > { %2215 = vst [vmem:[%s2727_s12 + $0x30] sm:$0xff] %v2003_v60   ;;  %2219 = vst [vmem:[%s2727_s12 + $0x50] sm:$0xff] %v2023_v63  }
 0x109   : > { %2223 = vst [vmem:[%s2727_s12 + $0x70] sm:$0xff] %v2043_v0  }
 0x10a   : > { %v554_v1 = vpop.f32.mrb[12].mxu0 }
 0x10b   : > { %v594_v2 = vpop.f32.mrb[12].mxu1  ;;  %v556_v3 = vpop.f32.mrb[13].mxu0 }
 0x10c   : > { %v596_v4 = vpop.f32.mrb[13].mxu1  ;;  %v558_v5 = vpop.f32.mrb[14].mxu0 }
 0x10d   : > { %v598_v6 = vpop.f32.mrb[14].mxu1  ;;  %v1988_v7 = vpack.c.bf16 %v558_v5, %v554_v1  ;;  %v560_v9 = vpop.f32.mrb[15].mxu0 }
 0x10e   : > { %v2008_v8 = vpack.c.bf16 %v598_v6, %v594_v2  ;;  %v600_v10 = vpop.f32.mrb[15].mxu1  ;;  %v2028_v11 = vpack.c.bf16 %v560_v9, %v556_v3 }
 0x10f   : > { %v2048_v12 = vpack.c.bf16 %v600_v10, %v596_v4  ;;  %2212 = vst [vmem:[%s2727_s12 + $0x18] sm:$0xff] %v1988_v7  }
 0x110   : > { %2216 = vst [vmem:[%s2727_s12 + $0x38] sm:$0xff] %v2008_v8   ;;  %2220 = vst [vmem:[%s2727_s12 + $0x58] sm:$0xff] %v2028_v11  }
 0x111   : > { %2224 = vst [vmem:[%s2727_s12 + $0x78] sm:$0xff] %v2048_v12  }
 0x112   : > { %2374 = shalt.err (!%p2371_p5)
}
 0x113   : > { %s2375_s10 = scalar_lea.hbm %s2749_s20, 2048  ;;  %s2379_s19 = scalar_lea.hbm %s2928_s5, 4096 }
 0x114   : > { %p2376_p6 = scmp.ne.s32.totalorder %s2749_s20, %s2375_s10  ;;  %p2380_p10 = scmp.lt.u32.totalorder %s2749_s20, %s2928_s5 }
 0x115   : > { %p2381_p11 = scmp.lt.u32.totalorder %s2379_s19, %s2375_s10  ;;  %p2383_p13 = scmp.lt.u32.totalorder %s2375_s10, %s2749_s20 }
 0x116   : > { %p2377_p7 = pnand %p2376_p6, %p2589_p4 }
 0x117   : > { %p2382_p12 = por %p2381_p11, %p2380_p10 }
 0x118   : > { %p2378_p9 = pneg %p2377_p7 }
 0x119   : > { %p2384_p0 = por %p2383_p13, %p2382_p12 }
 0x11b   : > { %p2385_p1 = pnand %p2384_p0, %p2378_p9 }
 0x11d   : > { %2388 = shalt.err (!%p2385_p1)
}
 0x11e   : > { %s2932_s22 = smov 64   ;;  %s2934_s8 = smov 4   ;;  %v886_v13 = vpop.f32.mrb[16].mxu1  ;;  %v1184_v14 = vpop.f32.mrb[16].mxu0 }
 0x11f   : > { %2259 = dma.vmem_to_hbm [thread:$0]  (%p2589_p4), %s2751_s16, 2048, %s2749_s20, %s2759_s27, %s2932_s22, %s2932_s22, %s2934_s8   ;;  %v888_v15 = vpop.f32.mrb[17].mxu1  ;;  %v1186_v16 = vpop.f32.mrb[17].mxu0 }
 0x120   : > { %v890_v17 = vpop.f32.mrb[18].mxu1  ;;  %v1188_v18 = vpop.f32.mrb[18].mxu0  ;;  %s2787_s10 = scalar_lea.vmem [#allocation4], %s2724_s18  ;;  %s2791_s12 = scalar_lea.vmem [#allocation6], %s2724_s18 }
 0x121   : > { %v2053_v19 = vpack.c.bf16 %v890_v17, %v886_v13  ;;  %v2133_v20 = vpack.c.bf16 %v1188_v18, %v1184_v14  ;;  %v892_v21 = vpop.f32.mrb[19].mxu1  ;;  %v1190_v22 = vpop.f32.mrb[19].mxu0  ;;  %s2822_s18 = sand.u32 1, %s1650_s30   ;;  %s1468_s16 = sshll.u32 %s2787_s10, 4  ;;  %s2832_s16 = int_to_ptr.vmem [resolvable:$true] %s1468_s16 }
 0x122   : > { %v2093_v23 = vpack.c.bf16 %v892_v21, %v888_v15  ;;  %v2173_v24 = vpack.c.bf16 %v1190_v22, %v1186_v16  ;;  %v896_v25 = vpop.f32.mrb[20].mxu1  ;;  %v1194_v26 = vpop.f32.mrb[20].mxu0  ;;  %s1486_s20 = sshll.u32 %s2791_s12, 4  ;;  %s2830_s17 = scalar_lea.hbm %s2929_s6, %s2742_s15  ;;  %s2842_s20 = int_to_ptr.vmem [resolvable:$true] %s1486_s20 }
 0x123   : > { %2054 = vst [vmem:[%s2787_s10] sm:$0xff] %v2053_v19   ;;  %2134 = vst [vmem:[%s2791_s12] sm:$0xff] %v2133_v20   ;;  %v898_v27 = vpop.f32.mrb[21].mxu1  ;;  %v1196_v28 = vpop.f32.mrb[21].mxu0  ;;  %s2840_s21 = scalar_lea.hbm %s2930_s7, %s2742_s15  ;;  %s1430_s22 = scalar_lea.sflag [#allocation5], %s2822_s18 }
 0x124   : > { %2232 = vst [vmem:[%s2787_s10 + $0x40] sm:$0xff] %v2093_v23   ;;  %2247 = vst [vmem:[%s2791_s12 + $0x40] sm:$0xff] %v2173_v24   ;;  %v900_v29 = vpop.f32.mrb[22].mxu1  ;;  %v1198_v30 = vpop.f32.mrb[22].mxu0  ;;  %s2389_s30 = scalar_lea.vmem %s2832_s16, 2048  ;;  %s2505_s27 = smov [#allocation4]  }
 0x125   : > { %v2058_v31 = vpack.c.bf16 %v900_v29, %v896_v25  ;;  %v2138_v32 = vpack.c.bf16 %v1198_v30, %v1194_v26  ;;  %v902_v33 = vpop.f32.mrb[23].mxu1  ;;  %v1200_v34 = vpop.f32.mrb[23].mxu0  ;;  %p2390_p2 = scmp.ne.s32.totalorder %s2832_s16, %s2389_s30  ;;  %s2393_s8 = sshll.u32 %s2505_s27, 4  ;;  %s2394_s8 = int_to_ptr.vmem [resolvable:$false] %s2393_s8 }
 0x126   : > { %v2098_v35 = vpack.c.bf16 %v902_v33, %v898_v27  ;;  %v2178_v36 = vpack.c.bf16 %v1200_v34, %v1196_v28  ;;  %v906_v37 = vpop.f32.mrb[24].mxu1  ;;  %v1204_v38 = vpop.f32.mrb[24].mxu0  ;;  %s2395_s0 = scalar_lea.vmem %s2394_s8, 4096  ;;  %p2396_p6 = scmp.lt.s32.totalorder %s2832_s16, %s2394_s8 }
 0x127   : > { %2225 = vst [vmem:[%s2787_s10 + $0x8] sm:$0xff] %v2058_v31   ;;  %2240 = vst [vmem:[%s2791_s12 + $0x8] sm:$0xff] %v2138_v32   ;;  %v908_v39 = vpop.f32.mrb[25].mxu1  ;;  %v1206_v40 = vpop.f32.mrb[25].mxu0  ;;  %p2391_p3 = pnand %p2390_p2, %p2589_p4  ;;  %p2397_p7 = scmp.lt.s32.totalorder %s2395_s0, %s2389_s30 }
 0x128   : > { %2233 = vst [vmem:[%s2787_s10 + $0x48] sm:$0xff] %v2098_v35   ;;  %2248 = vst [vmem:[%s2791_s12 + $0x48] sm:$0xff] %v2178_v36   ;;  %v910_v41 = vpop.f32.mrb[26].mxu1  ;;  %v1208_v42 = vpop.f32.mrb[26].mxu0 }
 0x129   : > { %v2063_v43 = vpack.c.bf16 %v910_v41, %v906_v37  ;;  %v2143_v44 = vpack.c.bf16 %v1208_v42, %v1204_v38  ;;  %v912_v45 = vpop.f32.mrb[27].mxu1  ;;  %v1210_v46 = vpop.f32.mrb[27].mxu0  ;;  %p2392_p5 = pneg %p2391_p3  ;;  %p2398_p9 = por %p2397_p7, %p2396_p6 }
 0x12a   : > { %v2103_v47 = vpack.c.bf16 %v912_v45, %v908_v39  ;;  %v2183_v48 = vpack.c.bf16 %v1210_v46, %v1206_v40  ;;  %v1214_v50 = vpop.f32.mrb[28].mxu0 }
 0x12b   : > { %2226 = vst [vmem:[%s2787_s10 + $0x10] sm:$0xff] %v2063_v43   ;;  %2241 = vst [vmem:[%s2791_s12 + $0x10] sm:$0xff] %v2143_v44   ;;  %v916_v49 = vpop.f32.mrb[28].mxu1  ;;  %v1216_v52 = vpop.f32.mrb[29].mxu0  ;;  %p2399_p10 = pnand %p2398_p9, %p2392_p5 }
 0x12c   : > { %2234 = vst [vmem:[%s2787_s10 + $0x50] sm:$0xff] %v2103_v47   ;;  %2249 = vst [vmem:[%s2791_s12 + $0x50] sm:$0xff] %v2183_v48   ;;  %v918_v51 = vpop.f32.mrb[29].mxu1  ;;  %v1218_v54 = vpop.f32.mrb[30].mxu0 }
 0x12d   : > { %v920_v53 = vpop.f32.mrb[30].mxu1  ;;  %v2148_v56 = vpack.c.bf16 %v1218_v54, %v1214_v50  ;;  %v1220_v58 = vpop.f32.mrb[31].mxu0 }
 0x12e   : > { %v2068_v55 = vpack.c.bf16 %v920_v53, %v916_v49  ;;  %v922_v57 = vpop.f32.mrb[31].mxu1  ;;  %v2188_v60 = vpack.c.bf16 %v1220_v58, %v1216_v52 }
 0x12f   : > { %v2108_v59 = vpack.c.bf16 %v922_v57, %v918_v51  ;;  %2242 = vst [vmem:[%s2791_s12 + $0x18] sm:$0xff] %v2148_v56  }
 0x130   : > { %2227 = vst [vmem:[%s2787_s10 + $0x18] sm:$0xff] %v2068_v55   ;;  %2250 = vst [vmem:[%s2791_s12 + $0x58] sm:$0xff] %v2188_v60  }
 0x131   : > { %2235 = vst [vmem:[%s2787_s10 + $0x58] sm:$0xff] %v2108_v59  }
 0x132   : > { %v1224_v62 = vpop.f32.mrb[32].mxu0 }
 0x133   : > { %v926_v61 = vpop.f32.mrb[32].mxu1  ;;  %v1226_v0 = vpop.f32.mrb[33].mxu0 }
 0x134   : > { %v928_v63 = vpop.f32.mrb[33].mxu1  ;;  %v1228_v2 = vpop.f32.mrb[34].mxu0 }
 0x135   : > { %v930_v1 = vpop.f32.mrb[34].mxu1  ;;  %v2153_v4 = vpack.c.bf16 %v1228_v2, %v1224_v62  ;;  %v1230_v6 = vpop.f32.mrb[35].mxu0 }
 0x136   : > { %v2073_v3 = vpack.c.bf16 %v930_v1, %v926_v61  ;;  %v932_v5 = vpop.f32.mrb[35].mxu1  ;;  %v2193_v8 = vpack.c.bf16 %v1230_v6, %v1226_v0 }
 0x137   : > { %v2113_v7 = vpack.c.bf16 %v932_v5, %v928_v63  ;;  %2243 = vst [vmem:[%s2791_s12 + $0x20] sm:$0xff] %v2153_v4  }
 0x138   : > { %2228 = vst [vmem:[%s2787_s10 + $0x20] sm:$0xff] %v2073_v3   ;;  %2251 = vst [vmem:[%s2791_s12 + $0x60] sm:$0xff] %v2193_v8  }
 0x139   : > { %2236 = vst [vmem:[%s2787_s10 + $0x60] sm:$0xff] %v2113_v7  }
 0x13a   : > { %v1234_v10 = vpop.f32.mrb[36].mxu0 }
 0x13b   : > { %v936_v9 = vpop.f32.mrb[36].mxu1  ;;  %v1236_v12 = vpop.f32.mrb[37].mxu0 }
 0x13c   : > { %v938_v11 = vpop.f32.mrb[37].mxu1  ;;  %v1238_v14 = vpop.f32.mrb[38].mxu0 }
 0x13d   : > { %v940_v13 = vpop.f32.mrb[38].mxu1  ;;  %v2158_v16 = vpack.c.bf16 %v1238_v14, %v1234_v10  ;;  %v1240_v18 = vpop.f32.mrb[39].mxu0 }
 0x13e   : > { %v2078_v15 = vpack.c.bf16 %v940_v13, %v936_v9  ;;  %v942_v17 = vpop.f32.mrb[39].mxu1  ;;  %v2198_v20 = vpack.c.bf16 %v1240_v18, %v1236_v12 }
 0x13f   : > { %v2118_v19 = vpack.c.bf16 %v942_v17, %v938_v11  ;;  %2244 = vst [vmem:[%s2791_s12 + $0x28] sm:$0xff] %v2158_v16  }
 0x140   : > { %2229 = vst [vmem:[%s2787_s10 + $0x28] sm:$0xff] %v2078_v15   ;;  %2252 = vst [vmem:[%s2791_s12 + $0x68] sm:$0xff] %v2198_v20  }
 0x141   : > { %2237 = vst [vmem:[%s2787_s10 + $0x68] sm:$0xff] %v2118_v19  }
 0x142   : > { %v1244_v22 = vpop.f32.mrb[40].mxu0 }
 0x143   : > { %v946_v21 = vpop.f32.mrb[40].mxu1  ;;  %v1246_v24 = vpop.f32.mrb[41].mxu0 }
 0x144   : > { %v948_v23 = vpop.f32.mrb[41].mxu1  ;;  %v1248_v26 = vpop.f32.mrb[42].mxu0 }
 0x145   : > { %v950_v25 = vpop.f32.mrb[42].mxu1  ;;  %v2163_v28 = vpack.c.bf16 %v1248_v26, %v1244_v22  ;;  %v1250_v30 = vpop.f32.mrb[43].mxu0 }
 0x146   : > { %v2083_v27 = vpack.c.bf16 %v950_v25, %v946_v21  ;;  %v952_v29 = vpop.f32.mrb[43].mxu1  ;;  %v2203_v32 = vpack.c.bf16 %v1250_v30, %v1246_v24 }
 0x147   : > { %v2123_v31 = vpack.c.bf16 %v952_v29, %v948_v23  ;;  %2245 = vst [vmem:[%s2791_s12 + $0x30] sm:$0xff] %v2163_v28  }
 0x148   : > { %2230 = vst [vmem:[%s2787_s10 + $0x30] sm:$0xff] %v2083_v27   ;;  %2253 = vst [vmem:[%s2791_s12 + $0x70] sm:$0xff] %v2203_v32  }
 0x149   : > { %2238 = vst [vmem:[%s2787_s10 + $0x70] sm:$0xff] %v2123_v31  }
 0x14a   : > { %v1254_v34 = vpop.f32.mrb[44].mxu0 }
 0x14b   : > { %v956_v33 = vpop.f32.mrb[44].mxu1  ;;  %v1256_v36 = vpop.f32.mrb[45].mxu0 }
 0x14c   : > { %v958_v35 = vpop.f32.mrb[45].mxu1  ;;  %v1258_v38 = vpop.f32.mrb[46].mxu0 }
 0x14d   : > { %v960_v37 = vpop.f32.mrb[46].mxu1  ;;  %v2168_v40 = vpack.c.bf16 %v1258_v38, %v1254_v34  ;;  %v1260_v42 = vpop.f32.mrb[47].mxu0 }
 0x14e   : > { %v2088_v39 = vpack.c.bf16 %v960_v37, %v956_v33  ;;  %v962_v41 = vpop.f32.mrb[47].mxu1  ;;  %v2208_v44 = vpack.c.bf16 %v1260_v42, %v1256_v36 }
 0x14f   : > { %v2128_v43 = vpack.c.bf16 %v962_v41, %v958_v35  ;;  %2246 = vst [vmem:[%s2791_s12 + $0x38] sm:$0xff] %v2168_v40  }
 0x150   : > { %2231 = vst [vmem:[%s2787_s10 + $0x38] sm:$0xff] %v2088_v39   ;;  %2254 = vst [vmem:[%s2791_s12 + $0x78] sm:$0xff] %v2208_v44  }
 0x151   : > { %2239 = vst [vmem:[%s2787_s10 + $0x78] sm:$0xff] %v2128_v43  }
 0x152   : > { %2402 = shalt.err (!%p2399_p10)
}
 0x153   : > { %s2403_s15 = scalar_lea.hbm %s2830_s17, 2048  ;;  %s2407_s19 = scalar_lea.hbm %s2929_s6, 4096 }
 0x154   : > { %p2404_p11 = scmp.ne.s32.totalorder %s2830_s17, %s2403_s15  ;;  %p2408_p0 = scmp.lt.u32.totalorder %s2830_s17, %s2929_s6 }
 0x155   : > { %p2409_p1 = scmp.lt.u32.totalorder %s2407_s19, %s2403_s15  ;;  %p2411_p3 = scmp.lt.u32.totalorder %s2403_s15, %s2830_s17 }
 0x156   : > { %p2405_p12 = pnand %p2404_p11, %p2589_p4 }
 0x157   : > { %p2410_p2 = por %p2409_p1, %p2408_p0 }
 0x158   : > { %p2406_p13 = pneg %p2405_p12 }
 0x159   : > { %p2412_p5 = por %p2411_p3, %p2410_p2 }
 0x15b   : > { %p2413_p6 = pnand %p2412_p5, %p2406_p13 }
 0x15d   : > { %2416 = shalt.err (!%p2413_p6)
}
 0x15e   : > { %s2940_s0 = smov 4   ;;  %s2941_s30 = smov 64  }
 0x15f   : > { %2260 = dma.vmem_to_hbm [thread:$0]  (%p2589_p4), %s2832_s16, 2048, %s2830_s17, %s1430_s22, %s2941_s30, %s2941_s30, %s2940_s0  }
 0x160   : > { %s2417_s27 = scalar_lea.vmem %s2842_s20, 2048  ;;  %s2506_s15 = smov [#allocation6]  }
 0x161   : > { %p2418_p7 = scmp.ne.s32.totalorder %s2842_s20, %s2417_s27  ;;  %s2421_s10 = sshll.u32 %s2506_s15, 4  ;;  %s2422_s10 = int_to_ptr.vmem [resolvable:$false] %s2421_s10 }
 0x162   : > { %s2423_s12 = scalar_lea.vmem %s2422_s10, 4096  ;;  %p2424_p11 = scmp.lt.s32.totalorder %s2842_s20, %s2422_s10 }
 0x163   : > { %p2419_p9 = pnand %p2418_p7, %p2589_p4  ;;  %p2425_p12 = scmp.lt.s32.totalorder %s2423_s12, %s2417_s27 }
 0x165   : > { %p2420_p10 = pneg %p2419_p9  ;;  %p2426_p13 = por %p2425_p12, %p2424_p11 }
 0x167   : > { %p2427_p0 = pnand %p2426_p13, %p2420_p10 }
 0x169   : > { %2430 = shalt.err (!%p2427_p0)
}
 0x16a   : > { %s2431_s16 = scalar_lea.hbm %s2840_s21, 2048  ;;  %s2435_s23 = scalar_lea.hbm %s2930_s7, 4096 }
 0x16b   : > { %p2432_p1 = scmp.ne.s32.totalorder %s2840_s21, %s2431_s16  ;;  %p2436_p5 = scmp.lt.u32.totalorder %s2840_s21, %s2930_s7 }
 0x16c   : > { %p2437_p6 = scmp.lt.u32.totalorder %s2435_s23, %s2431_s16  ;;  %p2439_p9 = scmp.lt.u32.totalorder %s2431_s16, %s2840_s21 }
 0x16d   : > { %p2433_p2 = pnand %p2432_p1, %p2589_p4 }
 0x16e   : > { %p2438_p7 = por %p2437_p6, %p2436_p5 }
 0x16f   : > { %p2434_p3 = pneg %p2433_p2 }
 0x170   : > { %p2440_p10 = por %p2439_p9, %p2438_p7 }
 0x172   : > { %p2441_p11 = pnand %p2440_p10, %p2434_p3 }
 0x174   : > { %2444 = shalt.err (!%p2441_p11)
}
 0x175   : > { %2261 = dma.vmem_to_hbm [thread:$0]  (%p2589_p4), %s2842_s20, 2048, %s2840_s21, %s1430_s22, %s2941_s30, %s2941_s30, %s2940_s0  }
 0x176 PF: > { %p2275_p12 = scmp.ge.s32.totalorder %s2499_s29, 2  ;;  %s1501_s27 = sand.u32 1, %s2479_s24  }
 0x177   : > { %s1502_s10 = scalar_lea.sflag [#allocation3], %s1501_s27 }
 0x178   : > { %p2266_p13 = pnand %p2275_p12, %p2598_p8 }
 0x17a   : > { %2470 = dma.done.wait (!%p2266_p13), %s1502_s10, 2048  }
 0x17b   : > { %2472 = vsyncadd (!%p2266_p13), %s1502_s10, 4294965248  ;;  %s2942_s11 = sadd.s32 4294967294, %s2499_s29  }
 0x17c   : > { %s1510_s12 = sand.u32 1, %s2942_s11  }
 0x17d   : > { %s1511_s16 = scalar_lea.sflag [#allocation5], %s1510_s12 }
 0x17e   : > { %2474 = dma.done.wait (!%p2266_p13), %s1511_s16, 4096  }
 0x17f   : > { %2476 = vsyncadd (!%p2266_p13), %s1511_s16, 4294963200  ;;  %s24_s29 = sadd.s32 1, %s2499_s29   ;;  %s2943_s24 = smov %s2483_s25 }
 0x180   : > { %p21_p4 = scmp.ge.s32.totalorder %s24_s29, 4   ;;  %s2944_s25 = smov %s2487_s26 }
 0x181   : > { %s2945_s26 = smov %s2604_s14  ;;  %s2946_s27 = smov %s2495_s28 }
 0x182   : > { %s2947_s28 = smov %s2949_s9  ;;  %23 = sbr.rel (!%p21_p4) target bundleno = 8 (0x8), region = 113 }
 0x189   :  { %1525 = vsyncpa [#allocation3], 1 }
 0x18a   :  { %1527 = vsyncpa [#allocation3 + $0x1], 1 }
 0x18b   :  { %1528 = vsyncpa [#allocation5], 1 }
 0x18c   :  { %1530 = vsyncpa [#allocation5 + $0x1], 1 }

</bundles_post_ra>
